<compile_context>
chip_gen: v7x
topology: tpu7x:2x2x1
jax: 0.10.0
libtpu: 0.0.40
codegen_flags: <defaults>
</compile_context>

<pallas_src>
from functools import partial

import jax
import jax.numpy as jnp
from jax.experimental import pallas as pl
from jax.experimental.pallas import tpu as pltpu


# Safe on every generation (v7x has only 64 MiB physical VMEM); tiles below
# use only a few MiB.
_VMEM_LIMIT = 32 * 1024 * 1024


def _round_up(x, m):
    return ((x + m - 1) // m) * m


def _choose_tile(dim, target, align):
    """Pick a tile ~target; prefer exact divisors, avoid huge padding for small dims."""
    if dim >= target:
        if dim % target == 0:
            return target
        half = target // 2
        if half >= align and dim % half == 0:
            return half
        return target                    # pad up to a multiple of target
    return _round_up(dim, align)         # small dim: single (padded) tile


# ----------------------- linear (tiled matmul, bf16 MXU feed) -----------------------

def _linear_kernel(x_ref, w_ref, b_ref, o_ref, acc_ref):
    k = pl.program_id(2)

    @pl.when(k == 0)
    def _():
        acc_ref[...] = jnp.zeros(acc_ref.shape, acc_ref.dtype)

    # bf16 operands feed the MXU at native rate; accumulate in f32.
    acc_ref[...] += jnp.dot(x_ref[...].astype(jnp.bfloat16),
                            w_ref[...].astype(jnp.bfloat16),
                            preferred_element_type=jnp.float32)

    @pl.when(k == pl.num_programs(2) - 1)
    def _():
        o_ref[...] = (acc_ref[...] + b_ref[...].astype(jnp.float32)).astype(o_ref.dtype)


def pallas_linear(x2d, w, b, *, out_dtype=None, bm=256, bn=512, bk=512):
    """x2d: [N, Cin] @ w: [Cin, Cout] + b: [Cout] -> [N, Cout] (out_dtype)."""
    n, cin = x2d.shape
    cout = w.shape[1]
    out_dtype = out_dtype or x2d.dtype

    bm = _choose_tile(n, bm, 8)          # row tile (>=2 row blocks helps v7x megacore)
    bn = _choose_tile(cout, bn, 128)     # output-column tile
    bk = _choose_tile(cin, bk, 128)      # reduction tile

    n_p, cin_p, cout_p = _round_up(n, bm), _round_up(cin, bk), _round_up(cout, bn)

    x_p = x2d if (n_p == n and cin_p == cin) else jnp.pad(
        x2d, ((0, n_p - n), (0, cin_p - cin)))
    w_p = w if (cin_p == cin and cout_p == cout) else jnp.pad(
        w, ((0, cin_p - cin), (0, cout_p - cout)))
    b_p = (b if cout_p == cout else jnp.pad(b, (0, cout_p - cout))).reshape(1, cout_p)

    grid = (n_p // bm, cout_p // bn, cin_p // bk)
    out = pl.pallas_call(
        _linear_kernel,
        out_shape=jax.ShapeDtypeStruct((n_p, cout_p), out_dtype),
        grid_spec=pltpu.PrefetchScalarGridSpec(
            num_scalar_prefetch=0,
            grid=grid,
            in_specs=[
                pl.BlockSpec((bm, bk), lambda i, j, k: (i, k)),
                pl.BlockSpec((bk, bn), lambda i, j, k: (k, j)),
                pl.BlockSpec((1, bn), lambda i, j, k: (0, j)),
            ],
            out_specs=pl.BlockSpec((bm, bn), lambda i, j, k: (i, j)),
            scratch_shapes=[pltpu.VMEM((bm, bn), jnp.float32)],
        ),
        compiler_params=pltpu.CompilerParams(
            dimension_semantics=("parallel", "parallel", "arbitrary"),
            vmem_limit_bytes=_VMEM_LIMIT,
        ),
    )(x_p, w_p, b_p)

    if n_p != n or cout_p != cout:
        out = out[:n, :cout]
    return out


# ------------------- hoisted Q/K RMS-norm kernel (one pass over qkv) -------------------

def _qk_norm_kernel(q_ref, k_ref, sq_ref, sk_ref, hmask_ref, qn_ref, kn_ref):
    hmask = hmask_ref[...]                                   # (C, C) block-diag ones

    def _norm(x_ref, scale_ref, o_ref):
        x = x_ref[...].astype(jnp.float32)                   # (bl, C) lane-dense
        # Per-head sum of squares broadcast to every lane of its head with one
        # small MXU matmul (keeps everything lane-dense; no (bl, H, D) reshape).
        ssq = jnp.dot(x * x, hmask, preferred_element_type=jnp.float32)
        inv = jax.lax.rsqrt(jnp.maximum(ssq, 1e-24))         # == 1/max(||x||, 1e-12)
        o_ref[...] = (x * inv * scale_ref[...]).astype(o_ref.dtype)

    _norm(q_ref, sq_ref, qn_ref)
    _norm(k_ref, sk_ref, kn_ref)


def pallas_qk_rms_norm(qkv, gamma_q, gamma_k, *, block_l=256):
    """Per-head RMS-norm of the q/k slices of qkv [B, L, 3, C].

    The 1/sqrt(D) softmax scale is folded into q:
        q_out = (q / ||q||_head) * gamma_q
        k_out = (k / ||k||_head) * gamma_k * sqrt(D)
    so attention can use scale 1.0.
    """
    B, L, three, C = qkv.shape
    assert three == 3
    H, D = gamma_q.shape

    bl = block_l if L % block_l == 0 else 128
    bl = min(bl, L)

    head_id = jnp.arange(C, dtype=jnp.int32) // D
    hmask = (head_id[:, None] == head_id[None, :]).astype(jnp.float32)   # (C, C)
    sq = gamma_q.astype(jnp.float32).reshape(1, C)
    sk = (gamma_k.astype(jnp.float32) * (D ** 0.5)).reshape(1, C)

    grid = (B, L // bl)
    return pl.pallas_call(
        _qk_norm_kernel,
        out_shape=(jax.ShapeDtypeStruct((B, L, C), qkv.dtype),
                   jax.ShapeDtypeStruct((B, L, C), qkv.dtype)),
        grid_spec=pltpu.PrefetchScalarGridSpec(
            num_scalar_prefetch=0,
            grid=grid,
            in_specs=[
                pl.BlockSpec((None, bl, None, C), lambda b, i: (b, i, 0, 0)),  # q slice
                pl.BlockSpec((None, bl, None, C), lambda b, i: (b, i, 1, 0)),  # k slice
                pl.BlockSpec((1, C), lambda b, i: (0, 0)),
                pl.BlockSpec((1, C), lambda b, i: (0, 0)),
                pl.BlockSpec((C, C), lambda b, i: (0, 0)),
            ],
            out_specs=[
                pl.BlockSpec((None, bl, C), lambda b, i: (b, i, 0)),
                pl.BlockSpec((None, bl, C), lambda b, i: (b, i, 0)),
            ],
        ),
        compiler_params=pltpu.CompilerParams(
            dimension_semantics=("parallel", "parallel"),
            vmem_limit_bytes=_VMEM_LIMIT,
        ),
    )(qkv, qkv, sq, sk, hmask)


# -------------------- flash attention (all heads per grid step) --------------------

def _flash_attn_kernel(q_ref, k_ref, v_ref, o_ref, m_ref, l_ref, acc_ref,
                       *, num_heads, head_dim, sm_scale, seq_len, block_k,
                       needs_mask):
    ki = pl.program_id(2)

    @pl.when(ki == 0)
    def _():
        m_ref[...] = jnp.full(m_ref.shape, -jnp.inf, dtype=m_ref.dtype)
        l_ref[...] = jnp.zeros(l_ref.shape, l_ref.dtype)
        acc_ref[...] = jnp.zeros(acc_ref.shape, acc_ref.dtype)

    q = q_ref[...]                         # (bq, C) bf16, already normalized/scaled
    k = k_ref[...]                         # (bk, C) bf16
    v = v_ref[...]                         # (bk, C) bf16

    if needs_mask:                         # key-padding mask (static python flag)
        col = ki * block_k + jax.lax.broadcasted_iota(jnp.int32, (1, block_k), 1)
        valid = col < seq_len

    for h in range(num_heads):             # static unroll over heads
        lo = h * head_dim
        hi = lo + head_dim
        q_h = q[:, lo:hi]
        k_h = k[:, lo:hi]
        v_h = v[:, lo:hi]

        # q_h @ k_h^T contracting D directly (no materialized transpose of k).
        s = jax.lax.dot_general(q_h, k_h, (((1,), (1,)), ((), ())),
                                preferred_element_type=jnp.float32)   # (bq, bk)
        if sm_scale != 1.0:
            s = s * sm_scale
        if needs_mask:
            s = jnp.where(valid, s, -jnp.inf)

        # Online softmax update (per-head state lives in lane h of m/l).
        m_prev = m_ref[:, h:h + 1]
        m_new = jnp.maximum(m_prev, jnp.max(s, axis=-1, keepdims=True))
        alpha = jnp.exp(m_prev - m_new)
        p = jnp.exp(s - m_new)
        l_ref[:, h:h + 1] = alpha * l_ref[:, h:h + 1] + jnp.sum(p, axis=-1,
                                                                keepdims=True)
        acc_ref[:, lo:hi] = alpha * acc_ref[:, lo:hi] + jnp.dot(
            p.astype(v_h.dtype), v_h, preferred_element_type=jnp.float32)
        m_ref[:, h:h + 1] = m_new

    @pl.when(ki == pl.num_programs(2) - 1)
    def _():
        acc = acc_ref[...]                                   # (bq, C) f32
        inv = 1.0 / l_ref[...]                               # exact; O(bq*H), cheap
        parts = [acc[:, h * head_dim:(h + 1) * head_dim] * inv[:, h:h + 1]
                 for h in range(num_heads)]
        # Single lane-dense (bq, C) store.
        o_ref[...] = jnp.concatenate(parts, axis=-1).astype(o_ref.dtype)


def pallas_flash_attention(qkv, gamma_q, gamma_k, *, num_heads, qk_rms_norm,
                           block_q=256, block_k=128):
    """qkv: [B, L, 3, C] (heads folded into the lane dim) -> out [B, L, C]."""
    B, L, three, C = qkv.shape
    assert three == 3
    H = num_heads
    D = C // H

    # Pad L to a multiple of 128 and mask padded key columns instead of
    # falling back to tiny / untiled blocks.
    L_pad = _round_up(L, 128)
    if L_pad != L:
        qkv = jnp.pad(qkv, ((0, 0), (0, L_pad - L), (0, 0), (0, 0)))
    needs_mask = L_pad != L

    bq = block_q if L_pad % block_q == 0 else 128
    bq = min(bq, L_pad)
    bk = block_k if L_pad % block_k == 0 else 128
    bk = min(bk, L_pad)
    grid = (B, L_pad // bq, L_pad // bk)

    v_spec = pl.BlockSpec((None, bk, None, C), lambda b, qi, ki: (b, ki, 2, 0))
    if qk_rms_norm:
        # Hoisted RMS-norm: done once per token, not once per (qi, ki) pair.
        qn, kn = pallas_qk_rms_norm(qkv, gamma_q, gamma_k)
        q_in, k_in = qn, kn
        q_spec = pl.BlockSpec((None, bq, C), lambda b, qi, ki: (b, qi, 0))
        k_spec = pl.BlockSpec((None, bk, C), lambda b, qi, ki: (b, ki, 0))
        sm_scale = 1.0                       # folded into the pre-normalized q
    else:
        q_in, k_in = qkv, qkv
        q_spec = pl.BlockSpec((None, bq, None, C), lambda b, qi, ki: (b, qi, 0, 0))
        k_spec = pl.BlockSpec((None, bk, None, C), lambda b, qi, ki: (b, ki, 1, 0))
        sm_scale = 1.0 / (D ** 0.5)

    out = pl.pallas_call(
        partial(_flash_attn_kernel, num_heads=H, head_dim=D, sm_scale=sm_scale,
                seq_len=L, block_k=bk, needs_mask=needs_mask),
        out_shape=jax.ShapeDtypeStruct((B, L_pad, C), qkv.dtype),
        grid_spec=pltpu.PrefetchScalarGridSpec(
            num_scalar_prefetch=0,
            grid=grid,
            in_specs=[q_spec, k_spec, v_spec],
            out_specs=pl.BlockSpec((None, bq, C), lambda b, qi, ki: (b, qi, 0)),
            scratch_shapes=[
                pltpu.VMEM((bq, H), jnp.float32),   # running max (per head)
                pltpu.VMEM((bq, H), jnp.float32),   # running denominator (per head)
                pltpu.VMEM((bq, C), jnp.float32),   # running PV, lane-dense over heads
            ],
        ),
        compiler_params=pltpu.CompilerParams(
            dimension_semantics=("parallel", "parallel", "arbitrary"),
            vmem_limit_bytes=_VMEM_LIMIT,
        ),
    )(q_in, k_in, qkv)

    if L_pad != L:
        out = out[:, :L]
    return out


# ------------------------------- module forward -------------------------------

def sparse_multi_head_attention_forward(x, params, *, num_heads, qk_rms_norm=True):
    """Dense-tensor path of SparseMultiHeadAttention (self, full attention)."""
    B, L, C = x.shape
    H = num_heads
    assert C % H == 0

    x2d = x.reshape(B * L, C)

    # to_qkv projection; bf16 output halves HBM traffic of the intermediate
    # that attention re-reads (f32 accumulation inside the kernel).
    qkv = pallas_linear(x2d, params["w_qkv"], params["b_qkv"],
                        out_dtype=jnp.bfloat16)              # [B*L, 3C]
    qkv4 = qkv.reshape(B, L, 3, C)                           # free reshape (_fused_pre)

    # TODO(synk): SparseTensor / 'serialized' / 'windowed' / RoPE / cross-attn
    # paths not implemented (no SparseTensor definition available); this covers
    # the dense 'self' + 'full' path.
    h = pallas_flash_attention(qkv4, params["gamma_q"], params["gamma_k"],
                               num_heads=H, qk_rms_norm=qk_rms_norm)  # [B, L, C] bf16

    out = pallas_linear(h.reshape(B * L, C), params["w_out"], params["b_out"],
                        out_dtype=x.dtype)                   # to_out
    return out.reshape(B, L, C)


# ------------------------------- pure-JAX reference -------------------------------

def reference_forward(x, params, *, num_heads, qk_rms_norm=True):
    B, L, C = x.shape
    H = num_heads
    D = C // H
    qkv = x.reshape(B * L, C) @ params["w_qkv"] + params["b_qkv"]
    qkv = qkv.reshape(B, L, 3, H, D)
    q, k, v = qkv[:, :, 0], qkv[:, :, 1], qkv[:, :, 2]       # [B, L, H, D]
    if qk_rms_norm:
        def rms(t, gamma):
            n = jnp.maximum(jnp.linalg.norm(t, axis=-1, keepdims=True), 1e-12)
            return (t / n) * gamma * (D ** 0.5)
        q = rms(q, params["gamma_q"])
        k = rms(k, params["gamma_k"])
    q = jnp.transpose(q, (0, 2, 1, 3))
    k = jnp.transpose(k, (0, 2, 1, 3))
    v = jnp.transpose(v, (0, 2, 1, 3))
    s = jnp.einsum("bhqd,bhkd->bhqk", q, k) / jnp.sqrt(jnp.float32(D))
    p = jax.nn.softmax(s, axis=-1)
    o = jnp.einsum("bhqk,bhkd->bhqd", p, v)
    o = jnp.transpose(o, (0, 2, 1, 3)).reshape(B * L, C)
    out = o @ params["w_out"] + params["b_out"]
    return out.reshape(B, L, C)


# ------------------------------------ main ------------------------------------

if __name__ == "__main__":
    B, L, C, H = 2, 256, 128, 4
    D = C // H

    key = jax.random.PRNGKey(0)
    k_x, k_wqkv, k_bqkv, k_wout, k_bout, k_gq, k_gk = jax.random.split(key, 7)

    x = jax.random.normal(k_x, (B, L, C), dtype=jnp.float32)

    params = {
        # nn.Linear(channels, 3*channels, bias=True) -> weight stored as [C, 3C]
        "w_qkv": 0.05 * jax.random.normal(k_wqkv, (C, 3 * C), dtype=jnp.float32),
        "b_qkv": 0.01 * jax.random.normal(k_bqkv, (3 * C,), dtype=jnp.float32),
        # nn.Linear(channels, channels)
        "w_out": 0.05 * jax.random.normal(k_wout, (C, C), dtype=jnp.float32),
        "b_out": 0.01 * jax.random.normal(k_bout, (C,), dtype=jnp.float32),
        # SparseMultiHeadRMSNorm gamma [heads, dim]; init ones, perturbed here
        "gamma_q": jnp.ones((H, D), jnp.float32)
                   + 0.1 * jax.random.normal(k_gq, (H, D), dtype=jnp.float32),
        "gamma_k": jnp.ones((H, D), jnp.float32)
                   + 0.1 * jax.random.normal(k_gk, (H, D), dtype=jnp.float32),
    }

    out = sparse_multi_head_attention_forward(x, params, num_heads=H, qk_rms_norm=True)
    out = jax.block_until_ready(out)

    ref = reference_forward(x, params, num_heads=H, qk_rms_norm=True)
    assert out.shape == (B, L, C)
    # bf16 MXU operands + bf16 qkv/h intermediates (per perf review) vs. an f32
    # reference -> looser tolerance than a pure-f32 comparison.
    assert jnp.allclose(out, ref, atol=5e-2, rtol=5e-2), (
        f"Pallas output mismatch vs reference (max abs diff "
        f"{float(jnp.max(jnp.abs(out - ref)))})")

    print("KERNEL_OK")
</pallas_src>

<mosaic_0001>
module attributes {stable_mosaic.version = 11 : i64} {
  func.func @_linear_kernel(%arg0: i32, %arg1: i32, %arg2: i32, %arg3: memref<256x128xf32, #tpu.memory_space<vmem>>, %arg4: memref<128x384xf32, #tpu.memory_space<vmem>>, %arg5: memref<1x384xf32, #tpu.memory_space<vmem>>, %arg6: memref<256x384xbf16, #tpu.memory_space<vmem>>, %arg7: memref<256x384xf32, #tpu.memory_space<vmem>>) attributes {dimension_semantics = [#tpu.dimension_semantics<parallel>, #tpu.dimension_semantics<parallel>, #tpu.dimension_semantics<arbitrary>], iteration_bounds = array<i64: 2, 1, 1>, scalar_prefetch = 0 : i64, scratch_operands = 1 : i64, tpu.core_type = #tpu.core_type<tc>, window_params = [{transform_indices = @transform_0, window_bounds = array<i64: 256, 128>}, {transform_indices = @transform_1, window_bounds = array<i64: 128, 384>}, {transform_indices = @transform_2, window_bounds = array<i64: 1, 384>}, {transform_indices = @transform_3, window_bounds = array<i64: 256, 384>}]} {
    %c0_i32 = arith.constant 0 : i32
    %0 = arith.cmpi eq, %arg2, %c0_i32 : i32
    %1 = arith.extui %0 : i1 to i32
    %c0_i32_0 = arith.constant 0 : i32
    %2 = arith.cmpi ne, %1, %c0_i32_0 : i32
    scf.if %2 {
      %cst_10 = arith.constant 0.000000e+00 : f32
      %14 = vector.broadcast %cst_10 : f32 to vector<256x384xf32>
      %c0_11 = arith.constant 0 : index
      %c0_12 = arith.constant 0 : index
      %15 = vector.load %arg7[%c0_11, %c0_12] : memref<256x384xf32, #tpu.memory_space<vmem>>, vector<256x384xf32>
      tpu.vector_store %arg7[%c0_11, %c0_12], %14 {strides = array<i32>} : memref<256x384xf32, #tpu.memory_space<vmem>>, vector<256x384xf32>,
    } else {
    }
    %c0 = arith.constant 0 : index
    %c0_1 = arith.constant 0 : index
    %3 = vector.load %arg7[%c0, %c0_1] : memref<256x384xf32, #tpu.memory_space<vmem>>, vector<256x384xf32>
    %c0_2 = arith.constant 0 : index
    %c0_3 = arith.constant 0 : index
    %4 = vector.load %arg3[%c0_2, %c0_3] : memref<256x128xf32, #tpu.memory_space<vmem>>, vector<256x128xf32>
    %5 = arith.truncf %4 : vector<256x128xf32> to vector<256x128xbf16>
    %c0_4 = arith.constant 0 : index
    %c0_5 = arith.constant 0 : index
    %6 = vector.load %arg4[%c0_4, %c0_5] : memref<128x384xf32, #tpu.memory_space<vmem>>, vector<128x384xf32>
    %7 = arith.truncf %6 : vector<128x384xf32> to vector<128x384xbf16>
    %cst = arith.constant dense<0.000000e+00> : vector<256x384xf32>
    %8 = tpu.matmul %5, %7, %cst {dimension_numbers = #tpu.dot_dimension_numbers<[1], [0], [0], [1], [0, 0, 1, 1], [], []>} : vector<256x128xbf16>, vector<128x384xbf16>, vector<256x384xf32> -> vector<256x384xf32>
    %9 = arith.addf %3, %8 : vector<256x384xf32>
    %c0_6 = arith.constant 0 : index
    %c0_7 = arith.constant 0 : index
    %10 = vector.load %arg7[%c0_6, %c0_7] : memref<256x384xf32, #tpu.memory_space<vmem>>, vector<256x384xf32>
    tpu.vector_store %arg7[%c0_6, %c0_7], %9 {strides = array<i32>} : memref<256x384xf32, #tpu.memory_space<vmem>>, vector<256x384xf32>,
    %c0_i32_8 = arith.constant 0 : i32
    %11 = arith.cmpi eq, %arg2, %c0_i32_8 : i32
    %12 = arith.extui %11 : i1 to i32
    %c0_i32_9 = arith.constant 0 : i32
    %13 = arith.cmpi ne, %12, %c0_i32_9 : i32
    scf.if %13 {
      %c0_10 = arith.constant 0 : index
      %c0_11 = arith.constant 0 : index
      %14 = vector.load %arg7[%c0_10, %c0_11] : memref<256x384xf32, #tpu.memory_space<vmem>>, vector<256x384xf32>
      %c0_12 = arith.constant 0 : index
      %c0_13 = arith.constant 0 : index
      %15 = vector.load %arg5[%c0_12, %c0_13] : memref<1x384xf32, #tpu.memory_space<vmem>>, vector<1x384xf32>
      %16 = vector.broadcast %15 : vector<1x384xf32> to vector<256x384xf32>
      %17 = arith.addf %14, %16 : vector<256x384xf32>
      %18 = arith.truncf %17 : vector<256x384xf32> to vector<256x384xbf16>
      %c0_14 = arith.constant 0 : index
      %c0_15 = arith.constant 0 : index
      %19 = vector.load %arg6[%c0_14, %c0_15] : memref<256x384xbf16, #tpu.memory_space<vmem>>, vector<256x384xbf16>
      tpu.vector_store %arg6[%c0_14, %c0_15], %18 {strides = array<i32>} : memref<256x384xbf16, #tpu.memory_space<vmem>>, vector<256x384xbf16>,
    } else {
    }
    return
  }
  func.func @transform_0(%arg0: i32, %arg1: i32, %arg2: i32) -> (i32, i32) {
    %c0_i32 = arith.constant 0 : i32
    return %arg0, %arg2 : i32, i32
  }
  func.func @transform_1(%arg0: i32, %arg1: i32, %arg2: i32) -> (i32, i32) {
    %c0_i32 = arith.constant 0 : i32
    return %arg2, %arg1 : i32, i32
  }
  func.func @transform_2(%arg0: i32, %arg1: i32, %arg2: i32) -> (i32, i32) {
    %c0_i32 = arith.constant 0 : i32
    %c0_i32_0 = arith.constant 0 : i32
    return %c0_i32, %arg1 : i32, i32
  }
  func.func @transform_3(%arg0: i32, %arg1: i32, %arg2: i32) -> (i32, i32) {
    %c0_i32 = arith.constant 0 : i32
    return %arg0, %arg1 : i32, i32
  }
}

</mosaic_0001>

<bundles_post_ra>
// kernel: tpu_custom_call.1
= control target key start
LH: loop header
LB: loop body
LE: loop exit
PB: predicated region body
PF: predicated region fallthrough
CT: control target
= control target key end

     0   :  { %8 = vsyncpa [#allocation4], 0  ;;  %s2821_s0 = inlined_call_operand.hbm [shape: f32[512,128], index: 0, kind: input, shape index: {}]   ;;  %s2822_s1 = inlined_call_operand.hbm [shape: f32[128,384], index: 1, kind: input, shape index: {}]   ;;  %s2823_s2 = inlined_call_operand.vmem [shape: f32[1,384], index: 2, kind: input, shape index: {}]   ;;  %s2824_s3 = inlined_call_operand.hbm [shape: bf16[512,384], index: 3, kind: output, shape index: {}]  }
   0x1   :  { %10 = vsyncpa [#allocation4 + $0x1], 0 }
   0x2   :  { %11 = vsyncpa [#allocation7], 0 }
   0x3   :  { %12 = vsyncpa [#allocation5], 0 }
   0x4   :  { %14 = vsyncpa [#allocation5 + $0x1], 0  ;;  %s2349_s12 = smov 0   ;;  %s2351_s13 = smov 0  }
   0x5   :  { %s2353_s14 = smov 0   ;;  %s2355_s15 = smov 0  }
   0x6   :  { %s2357_s16 = smov 0   ;;  %s2359_s17 = smov 0  }
   0x7 LB: > { %s1857_s18 = sadd.s32 4294967295, %s2317_s17   ;;  %s1858_s19 = sadd.s32 4294967294, %s2317_s17   ;;  %s2317_s17 = sphi %s2359_s17, %s20_s17   ;;  %s2313_s16 = sphi %s2357_s16, %s2848_s16   ;;  %s2309_s15 = sphi %s2355_s15, %s2847_s15   ;;  %s2305_s14 = sphi %s2353_s14, %s2846_s14   ;;  %s2301_s13 = sphi %s2351_s13, %s2845_s13   ;;  %s2297_s12 = sphi %s2349_s12, %s2844_s12  }
   0x8   : > { %p61_p0 = scmp.ne.s32.totalorder %s2301_s13, %s2297_s12  ;;  %p2383_p1 = scmp.eq.s32.totalorder %s1857_s18, 0 }
   0x9   : > { %p2387_p2 = scmp.eq.s32.totalorder %s1857_s18, 1  ;;  %p147_p3 = scmp.eq.s32.totalorder %s1858_s19, 1 }
   0xa   : > { %s2829_s20 = scalar_select %p2383_p1, 1, 0 }
   0xb   : > { %s2830_s21 = scalar_select %p2387_p2, 1, 0 }
   0xc   : > { %p2393_p4 = por %p2383_p1, %p61_p0  ;;  %p1859_p5 = scmp.ge.s32.totalorder %s2317_s17, 1 }
   0xd   : > { %p2398_p6 = por %p147_p3, %p61_p0  ;;  %p154_p7 = scmp.lt.s32.totalorder %s2317_s17, 3 }
   0xe   : > { %s2831_s22 = scalar_select %p2393_p4, 1, 0 }
   0xf   : > { %s2832_s23 = scalar_select %p2398_p6, 1, 0 }
  0x10   : > { %p2403_p8 = pnand %p1859_p5, %p154_p7  ;;  %s2319_s25 = smov [#allocation6]  }
  0x11   : > { %s172_s26 = sshll.u32 %s2319_s25, 4  ;;  %s39_s28 = sadd.s32 1, %s2313_s16  ;;  %s173_s26 = int_to_ptr.vmem [resolvable:$true] %s172_s26 }
  0x12   : > { %s2833_s24 = scalar_select %p2403_p8, 1, 0 }
  0x13   : > { %p2101_p9 = pneg %p2403_p8  ;;  %s2173_s4 = scalar_lea.hbm %s2822_s1, 6144 }
  0x14   : > { %p2174_p12 = scmp.ne.s32.totalorder %s2822_s1, %s2173_s4  ;;  %p2180_p5 = scmp.lt.u32.totalorder %s2173_s4, %s2822_s1 }
  0x15   : > { %p2412_p11 = pnand %p2101_p9, %p2383_p1 }
  0x17   : > { %p2175_p13 = pneg %p2412_p11 }
  0x19   : > { %p2176_p0 = pnand %p2175_p13, %p2174_p12 }
  0x1b   : > { %p2177_p3 = pneg %p2176_p0 }
  0x1d   : > { %p2182_p7 = pnand %p2180_p5, %p2177_p3 }
  0x1f   : > { %2185 = shalt.err (!%p2182_p7)
}
  0x20   : > { %s2186_s9 = scalar_lea.vmem %s173_s26, 6144  ;;  %p2194_p1 = scmp.lt.s32.totalorder %s173_s26, %s173_s26 }
  0x21   : > { %p2187_p9 = scmp.ne.s32.totalorder %s173_s26, %s2186_s9  ;;  %p2195_p4 = scmp.lt.s32.totalorder %s2186_s9, %s2186_s9 }
  0x23   : > { %p2189_p10 = pnand %p2187_p9, %p2175_p13  ;;  %p2196_p8 = por %p2195_p4, %p2194_p1 }
  0x25   : > { %p2190_p6 = pneg %p2189_p10 }
  0x27   : > { %p2197_p2 = pnand %p2196_p8, %p2190_p6 }
  0x29   : > { %2200 = shalt.err (!%p2197_p2)
}
  0x2a   : > { %s2320_s10 = smov 384   ;;  %s2321_s11 = smov 24  }
  0x2b   : > { %2104 = dma.hbm_to_vmem [thread:$0]  (!%p2412_p11), %s2822_s1, 6144, %s173_s26, [#allocation7], %s2320_s10, %s2320_s10, %s2321_s11  }
  0x2c   : > { %p41_p1 = scmp.ge.s32.totalorder %s39_s28, 2  ;;  %s48_s25 = sadd.s32 1, %s2305_s14 }
  0x2d   : > { %p55_p2 = scmp.ne.s32.totalorder %s2305_s14, %s2301_s13  ;;  %p56_p4 = scmp.eq.s32.totalorder %s2317_s17, 0 }
  0x2e   : > { %s2850_s28 = smov (%p41_p1, %s39_s28), 0  ;;  %p2836_p8 = scmp.ne.s32.totalorder %s2830_s21, 0 }
  0x2f   : > { %p2439_p6 = por %p56_p4, %p55_p2  ;;  %s43_s27 = ssub.s32 %s2313_s16, %s2850_s28 }
  0x30   : > { %p2445_p10 = por %p2836_p8, %p55_p2  ;;  %p2114_p12 = scmp.lt.s32.totalorder %s2317_s17, 2 }
  0x31   : > { %p46_p11 = scmp.eq.s32.totalorder %s43_s27, 0  ;;  %s194_s26 = sand.u32 1, %s2305_s14  }
  0x32   : > { %s1863_s4 = sshll.u32 %s194_s26, 8  ;;  %s1938_s6 = sshll.u32 %s2313_s16, 12 }
  0x33   : > { %s2454_s5 = scalar_select %p46_p11, %s2305_s14, %s48_s25  }
  0x34   : > { %s2460_s9 = scalar_lea.hbm %s2821_s0, %s1938_s6  ;;  %s198_s21 = scalar_lea.vmem [#allocation3], %s1863_s4 }
  0x35   : > { %s206_s10 = sshll.u32 %s198_s21, 4  ;;  %p2466_p13 = pnand %p2114_p12, %p2439_p6  ;;  %s2462_s10 = int_to_ptr.vmem [resolvable:$true] %s206_s10 }
  0x36   : > { %s2470_s18 = scalar_lea.sflag [#allocation4], %s194_s26  ;;  %s2201_s19 = scalar_lea.hbm %s2460_s9, 4096 }
  0x37   : > { %p2202_p0 = scmp.ne.s32.totalorder %s2460_s9, %s2201_s19  ;;  %p2203_p3 = pneg %p2466_p13 }
  0x38   : > { %s2206_s29 = scalar_lea.hbm %s2821_s0, 8192  ;;  %p2207_p9 = scmp.lt.u32.totalorder %s2460_s9, %s2821_s0 }
  0x39   : > { %p2204_p5 = pnand %p2203_p3, %p2202_p0  ;;  %p2208_p1 = scmp.lt.u32.totalorder %s2206_s29, %s2201_s19 }
  0x3a   : > { %p2210_p4 = scmp.lt.u32.totalorder %s2201_s19, %s2460_s9 }
  0x3b   : > { %p2205_p7 = pneg %p2204_p5  ;;  %p2209_p2 = por %p2208_p1, %p2207_p9 }
  0x3d   : > { %p2211_p6 = por %p2210_p4, %p2209_p2 }
  0x3f   : > { %p2212_p8 = pnand %p2211_p6, %p2205_p7 }
  0x41   : > { %2215 = shalt.err (!%p2212_p8)
}
  0x42   : > { %s2216_s26 = scalar_lea.vmem %s2462_s10, 4096  ;;  %s2322_s7 = smov [#allocation3]  }
  0x43   : > { %p2217_p12 = scmp.ne.s32.totalorder %s2462_s10, %s2216_s26  ;;  %s2221_s8 = sshll.u32 %s2322_s7, 4  ;;  %s2222_s8 = int_to_ptr.vmem [resolvable:$false] %s2221_s8 }
  0x44   : > { %s2223_s21 = scalar_lea.vmem %s2222_s8, 8192  ;;  %p2224_p5 = scmp.lt.s32.totalorder %s2462_s10, %s2222_s8 }
  0x45   : > { %p2219_p11 = pnand %p2217_p12, %p2203_p3  ;;  %p2225_p9 = scmp.lt.s32.totalorder %s2223_s21, %s2216_s26 }
  0x47   : > { %p2220_p0 = pneg %p2219_p11  ;;  %p2226_p1 = por %p2225_p9, %p2224_p5 }
  0x49   : > { %p2227_p2 = pnand %p2226_p1, %p2220_p0 }
  0x4b   : > { %2230 = shalt.err (!%p2227_p2)
}
  0x4c   : > { %s2323_s19 = smov 128   ;;  %s2324_s25 = smov 8  }
  0x4d   : > { %2108 = dma.hbm_to_vmem [thread:$0]  (!%p2466_p13), %s2460_s9, 4096, %s2462_s10, %s2470_s18, %s2323_s19, %s2323_s19, %s2324_s25  }
  0x4e   : > { %p2839_p3 = scmp.ne.s32.totalorder %s2833_s24, 0 }
  0x4f   : > { %s2501_s27 = sand.u32 (!%p2839_p3), 1, %s2301_s13   ;;  %p2840_p7 = scmp.ne.s32.totalorder (!%p2839_p3), %s2831_s22, 0 }
  0x50   : > { %218 = sbr.rel (%p2839_p3) target bundleno = 448 (0x1c0), region = 32  ;;  %s1867_s29 = sshll.u32 (!%p2839_p3), %s2501_s27, 8 }
  0x51   : > { %s221_s4 = scalar_lea.sflag (!%p2839_p3), [#allocation4], %s2501_s27  ;;  %s2505_s6 = scalar_lea.vmem (!%p2839_p3), [#allocation3], %s1867_s29 }
  0x57   : > { %2284 = dma.done.wait (%p2840_p7), %s221_s4, 4096  }
  0x58   : > { %2286 = vsyncadd (%p2840_p7), %s221_s4, 4294963200  ;;  %p2841_p13 = scmp.ne.s32.totalorder %s2829_s20, 0 }
  0x5a   : > { %2288 = dma.done.wait (%p2841_p13), [#allocation7], 6144  }
  0x5b   : > { %2290 = vsyncadd (%p2841_p13), [#allocation7], 4294961152  ;;  %v2325_v0 = vmov 0   ;;  %v511_v1 = vld [vmem:[#allocation6 + $0x8] sm:$0xff]  ;;  %v514_v2 = vld [vmem:[#allocation6 + $0x20] sm:$0xff]  ;;  %s2091_s24 = smul.u32 384, %s2501_s27 }
  0x5c   : > { %614 = vmatprep.mubr.bf16.mxu0 %v2325_v0  ;;  %734 = vmatprep.mubr.bf16.mxu1 %v2325_v0  ;;  %v510_v3 = vld [vmem:[#allocation6] sm:$0xff]  ;;  %v559_v4 = vpack.c.bf16 %v514_v2, %v511_v1  ;;  %v513_v5 = vld [vmem:[#allocation6 + $0x18] sm:$0xff]  ;;  %v520_v7 = vld [vmem:[#allocation6 + $0x50] sm:$0xff]  ;;  %s2092_s10 = smul.u32 6144, %s2309_s15  ;;  %s1725_s7 = scalar_lea.sflag [#allocation5], %s2501_s27 }
  0x5d   : > { %v517_v6 = vld [vmem:[#allocation6 + $0x38] sm:$0xff]  ;;  %v558_v8 = vpack.c.bf16 %v513_v5, %v510_v3  ;;  %v516_v10 = vld [vmem:[#allocation6 + $0x30] sm:$0xff]  ;;  %v519_v11 = vld [vmem:[#allocation6 + $0x48] sm:$0xff]  ;;  %s2607_s9 = scalar_lea.vmem [#allocation8], %s2091_s24  ;;  %s2326_s21 = smov [#allocation8]  }
  0x5e   : > { %v562_v9 = vpack.c.bf16 %v520_v7, %v517_v6  ;;  %v523_v12 = vld [vmem:[#allocation6 + $0x68] sm:$0xff]  ;;  %582 = vmatprep.subr.bf16.mxu0 %v559_v4  ;;  %2075 = vmatprep.subr.bf16.mxu1 %v559_v4  ;;  %v526_v13 = vld [vmem:[#allocation6 + $0x80] sm:$0xff]  ;;  %v561_v14 = vpack.c.bf16 %v519_v11, %v516_v10  ;;  %v525_v17 = vld [vmem:[#allocation6 + $0x78] sm:$0xff]  ;;  %s1741_s11 = sshll.u32 %s2607_s9, 4  ;;  %s2765_s26 = scalar_lea.hbm %s2824_s3, %s2092_s10  ;;  %s2767_s11 = int_to_ptr.vmem [resolvable:$true] %s1741_s11 }
  0x5f   : > { %583 = vmatpush1.bf16.msra.mxu0 %v558_v8  ;;  %2083 = vmatpush1.bf16.msra.mxu1 %v558_v8  ;;  %v565_v15 = vpack.c.bf16 %v526_v13, %v523_v12  ;;  %v522_v16 = vld [vmem:[#allocation6 + $0x60] sm:$0xff]  ;;  %v529_v18 = vld [vmem:[#allocation6 + $0x98] sm:$0xff]  ;;  %v532_v19 = vld [vmem:[#allocation6 + $0xb0] sm:$0xff]  ;;  %s2231_s8 = scalar_lea.vmem %s2767_s11, 6144  ;;  %s2235_s19 = sshll.u32 %s2326_s21, 4  ;;  %s2236_s19 = int_to_ptr.vmem [resolvable:$false] %s2235_s19 }
  0x60   : > { %584 = vmatprep.subr.bf16.mxu0 %v562_v9  ;;  %2076 = vmatprep.subr.bf16.mxu1 %v562_v9  ;;  %v564_v20 = vpack.c.bf16 %v525_v17, %v522_v16  ;;  %v568_v21 = vpack.c.bf16 %v532_v19, %v529_v18  ;;  %v528_v22 = vld [vmem:[#allocation6 + $0x90] sm:$0xff]  ;;  %v531_v23 = vld [vmem:[#allocation6 + $0xa8] sm:$0xff]  ;;  %v538_v25 = vld [vmem:[#allocation6 + $0xe0] sm:$0xff]  ;;  %p2232_p4 = scmp.ne.s32.totalorder %s2767_s11, %s2231_s8  ;;  %s2237_s25 = scalar_lea.vmem %s2236_s19, 12288 }
  0x61   : > { %v535_v24 = vld [vmem:[#allocation6 + $0xc8] sm:$0xff]  ;;  %v567_v26 = vpack.c.bf16 %v531_v23, %v528_v22  ;;  %v534_v28 = vld [vmem:[#allocation6 + $0xc0] sm:$0xff]  ;;  %v537_v29 = vld [vmem:[#allocation6 + $0xd8] sm:$0xff]  ;;  %p2238_p12 = scmp.lt.s32.totalorder %s2767_s11, %s2236_s19  ;;  %p2239_p11 = scmp.lt.s32.totalorder %s2237_s25, %s2231_s8 }
  0x62   : > { %v571_v27 = vpack.c.bf16 %v538_v25, %v535_v24  ;;  %v541_v30 = vld [vmem:[#allocation6 + $0xf8] sm:$0xff]  ;;  %v544_v31 = vld [vmem:[#allocation6 + $0x110] sm:$0xff]  ;;  %v570_v32 = vpack.c.bf16 %v537_v29, %v534_v28  ;;  %v543_v35 = vld [vmem:[#allocation6 + $0x108] sm:$0xff]  ;;  %p2233_p6 = pnand %p2232_p4, %p2445_p10 }
  0x63   : > { %585 = vmatpush1.bf16.msra.mxu0 %v561_v14  ;;  %2084 = vmatpush1.bf16.msra.mxu1 %v561_v14  ;;  %v574_v33 = vpack.c.bf16 %v544_v31, %v541_v30  ;;  %v540_v34 = vld [vmem:[#allocation6 + $0xf0] sm:$0xff]  ;;  %v547_v36 = vld [vmem:[#allocation6 + $0x128] sm:$0xff]  ;;  %v550_v37 = vld [vmem:[#allocation6 + $0x140] sm:$0xff]  ;;  %p2240_p0 = por %p2239_p11, %p2238_p12 }
  0x64   : > { %586 = vmatprep.subr.bf16.mxu0 %v565_v15  ;;  %2077 = vmatprep.subr.bf16.mxu1 %v565_v15  ;;  %v573_v38 = vpack.c.bf16 %v543_v35, %v540_v34  ;;  %v577_v39 = vpack.c.bf16 %v550_v37, %v547_v36  ;;  %v546_v40 = vld [vmem:[#allocation6 + $0x120] sm:$0xff]  ;;  %v549_v41 = vld [vmem:[#allocation6 + $0x138] sm:$0xff]  ;;  %v556_v43 = vld [vmem:[#allocation6 + $0x170] sm:$0xff]  ;;  %p2234_p8 = pneg %p2233_p6 }
  0x65   : > { %v553_v42 = vld [vmem:[#allocation6 + $0x158] sm:$0xff]  ;;  %v576_v44 = vpack.c.bf16 %v549_v41, %v546_v40  ;;  %v552_v46 = vld [vmem:[#allocation6 + $0x150] sm:$0xff]  ;;  %v555_v47 = vld [vmem:[#allocation6 + $0x168] sm:$0xff] }
  0x66   : > { %v580_v45 = vpack.c.bf16 %v556_v43, %v553_v42  ;;  %v512_v48 = vld [vmem:[#allocation6 + $0x10] sm:$0xff]  ;;  %v515_v49 = vld [vmem:[#allocation6 + $0x28] sm:$0xff]  ;;  %v462_v50 = vld [vmem:[%s2505_s6] sm:$0xff]  ;;  %v579_v51 = vpack.c.bf16 %v555_v47, %v552_v46  ;;  %p2241_p5 = pnand %p2240_p0, %p2234_p8 }
  0x67   : > { %587 = vmatpush1.bf16.msra.mxu0 %v564_v20  ;;  %2085 = vmatpush1.bf16.msra.mxu1 %v564_v20  ;;  %v463_v52 = vld [vmem:[%s2505_s6 + $0x8] sm:$0xff]  ;;  %v486_v53 = vld [vmem:[%s2505_s6 + $0xc0] sm:$0xff]  ;;  %v560_v55 = vpack.c.bf16 %v515_v49, %v512_v48  ;;  %v521_v57 = vld [vmem:[#allocation6 + $0x58] sm:$0xff] }
  0x68   : > { %588 = vmatprep.subr.bf16.mxu0 %v568_v21  ;;  %2078 = vmatprep.subr.bf16.mxu1 %v568_v21  ;;  %v487_v54 = vld [vmem:[%s2505_s6 + $0xc8] sm:$0xff]  ;;  %v518_v56 = vld [vmem:[#allocation6 + $0x40] sm:$0xff]  ;;  %v2521_v58 = vpack.c.bf16 %v463_v52, %v462_v50  ;;  %v524_v61 = vld [vmem:[#allocation6 + $0x70] sm:$0xff] }
  0x69   : > { %v2523_v59 = vpack.c.bf16 %v487_v54, %v486_v53  ;;  %v563_v60 = vpack.c.bf16 %v521_v57, %v518_v56  ;;  %v527_v62 = vld [vmem:[#allocation6 + $0x88] sm:$0xff]  ;;  %v464_v63 = vld [vmem:[%s2505_s6 + $0x10] sm:$0xff]  ;;  %v465_v1 = vld [vmem:[%s2505_s6 + $0x18] sm:$0xff] }
  0x6a   : > { %v488_v2 = vld [vmem:[%s2505_s6 + $0xd0] sm:$0xff]  ;;  %v489_v3 = vld [vmem:[%s2505_s6 + $0xd8] sm:$0xff]  ;;  %v566_v4 = vpack.c.bf16 %v527_v62, %v524_v61  ;;  %v530_v5 = vld [vmem:[#allocation6 + $0xa0] sm:$0xff]  ;;  %v495_v7 = vpack.c.bf16 %v465_v1, %v464_v63 }
  0x6b   : > { %589 = vmatpush1.bf16.msra.mxu0 %v567_v26  ;;  %2086 = vmatpush1.bf16.msra.mxu1 %v567_v26  ;;  %v533_v6 = vld [vmem:[#allocation6 + $0xb8] sm:$0xff]  ;;  %v2533_v8 = vpack.c.bf16 %v489_v3, %v488_v2  ;;  %v536_v10 = vld [vmem:[#allocation6 + $0xd0] sm:$0xff]  ;;  %v539_v11 = vld [vmem:[#allocation6 + $0xe8] sm:$0xff] }
  0x6c   : > { %590 = vmatprep.subr.bf16.mxu0 %v571_v27  ;;  %2079 = vmatprep.subr.bf16.mxu1 %v571_v27  ;;  %v569_v9 = vpack.c.bf16 %v533_v6, %v530_v5  ;;  %v466_v12 = vld [vmem:[%s2505_s6 + $0x20] sm:$0xff]  ;;  %v467_v13 = vld [vmem:[%s2505_s6 + $0x28] sm:$0xff]  ;;  %v572_v16 = vpack.c.bf16 %v539_v11, %v536_v10  ;;  %v545_v18 = vld [vmem:[#allocation6 + $0x118] sm:$0xff] }
  0x6d   : > { %v490_v14 = vld [vmem:[%s2505_s6 + $0xe0] sm:$0xff]  ;;  %v491_v15 = vld [vmem:[%s2505_s6 + $0xe8] sm:$0xff]  ;;  %v496_v19 = vpack.c.bf16 %v467_v13, %v466_v12  ;;  %v548_v22 = vld [vmem:[#allocation6 + $0x130] sm:$0xff] }
  0x6e   : > { %v542_v17 = vld [vmem:[#allocation6 + $0x100] sm:$0xff]  ;;  %v2542_v20 = vpack.c.bf16 %v491_v15, %v490_v14  ;;  %v551_v23 = vld [vmem:[#allocation6 + $0x148] sm:$0xff]  ;;  %v468_v24 = vld [vmem:[%s2505_s6 + $0x30] sm:$0xff] }
  0x6f   : > { %591 = vmatpush1.bf16.msra.mxu0 %v570_v32  ;;  %2087 = vmatpush1.bf16.msra.mxu1 %v570_v32  ;;  %v575_v21 = vpack.c.bf16 %v545_v18, %v542_v17  ;;  %v469_v25 = vld [vmem:[%s2505_s6 + $0x38] sm:$0xff]  ;;  %v492_v26 = vld [vmem:[%s2505_s6 + $0xf0] sm:$0xff]  ;;  %v578_v28 = vpack.c.bf16 %v551_v23, %v548_v22  ;;  %v554_v29 = vld [vmem:[#allocation6 + $0x160] sm:$0xff] }
  0x70   : > { %592 = vmatprep.subr.bf16.mxu0 %v574_v33  ;;  %2080 = vmatprep.subr.bf16.mxu1 %v574_v33  ;;  %v493_v27 = vld [vmem:[%s2505_s6 + $0xf8] sm:$0xff]  ;;  %v497_v31 = vpack.c.bf16 %v469_v25, %v468_v24  ;;  %v470_v34 = vld [vmem:[%s2505_s6 + $0x40] sm:$0xff]  ;;  %v471_v35 = vld [vmem:[%s2505_s6 + $0x48] sm:$0xff] }
  0x71   : > { %v557_v30 = vld [vmem:[#allocation6 + $0x178] sm:$0xff]  ;;  %v2551_v32 = vpack.c.bf16 %v493_v27, %v492_v26  ;;  %v498_v36 = vpack.c.bf16 %v471_v35, %v470_v34  ;;  %v472_v37 = vld [vmem:[%s2505_s6 + $0x50] sm:$0xff]  ;;  %v474_v40 = vld [vmem:[%s2505_s6 + $0x60] sm:$0xff] }
  0x72   : > { %v581_v33 = vpack.c.bf16 %v557_v30, %v554_v29  ;;  %v475_v41 = vld [vmem:[%s2505_s6 + $0x68] sm:$0xff]  ;;  %v476_v43 = vld [vmem:[%s2505_s6 + $0x70] sm:$0xff]  ;;  %v481_v50 = vld [vmem:[%s2505_s6 + $0x98] sm:$0xff] }
  0x73   : > { %593 = vmatpush1.bf16.msra.mxu0 %v573_v38  ;;  %2088 = vmatpush1.bf16.msra.mxu1 %v573_v38  ;;  %v473_v38 = vld [vmem:[%s2505_s6 + $0x58] sm:$0xff]  ;;  %v500_v42 = vpack.c.bf16 %v475_v41, %v474_v40  ;;  %v479_v46 = vld [vmem:[%s2505_s6 + $0x88] sm:$0xff]  ;;  %v480_v49 = vld [vmem:[%s2505_s6 + $0x90] sm:$0xff] }
  0x74   : > { %594 = vmatprep.subr.bf16.mxu0 %v577_v39  ;;  %2081 = vmatprep.subr.bf16.mxu1 %v577_v39  ;;  %v499_v39 = vpack.c.bf16 %v473_v38, %v472_v37  ;;  %v483_v52 = vld [vmem:[%s2505_s6 + $0xa8] sm:$0xff]  ;;  %v503_v53 = vpack.c.bf16 %v481_v50, %v480_v49  ;;  %v485_v56 = vld [vmem:[%s2505_s6 + $0xb8] sm:$0xff]  ;;  %v2589_v62 = vld [vmem:[%s2823_s2] sm:$0x7] }
  0x77   : > { %595 = vmatpush1.bf16.msra.mxu0 %v576_v44  ;;  %2089 = vmatpush1.bf16.msra.mxu1 %v576_v44  ;;  %v477_v44 = vld [vmem:[%s2505_s6 + $0x78] sm:$0xff] }
  0x78   : > { %596 = vmatprep.subr.bf16.mxu0 %v580_v45  ;;  %2082 = vmatprep.subr.bf16.mxu1 %v580_v45  ;;  %v478_v45 = vld [vmem:[%s2505_s6 + $0x80] sm:$0xff]  ;;  %v501_v47 = vpack.c.bf16 %v477_v44, %v476_v43 }
  0x79   : > { %v502_v48 = vpack.c.bf16 %v479_v46, %v478_v45 }
  0x7b   : > { %597 = vmatpush1.bf16.msra.mxu0 %v579_v51  ;;  %2090 = vmatpush1.bf16.msra.mxu1 %v579_v51  ;;  %v482_v51 = vld [vmem:[%s2505_s6 + $0xa0] sm:$0xff] }
  0x7c   : > { %2027 = vmatprep.subr.bf16.mxu1 %v560_v55  ;;  %v504_v54 = vpack.c.bf16 %v483_v52, %v482_v51 }
  0x7e   : > { %615 = vmatmul.mubr.bf16.vlgmr.msra.gmra.mrb[0].mxu0 %v2521_v58  ;;  %735 = vmatmul.mubr.bf16.vlgmr.msra.gmra.mrb[0].mxu1 %v2523_v59 }
  0x7f   : > { %2028 = vmatpush3.bf16.msra.mxu1 %v560_v55  ;;  %624 = vmatprep.mubr.bf16.mxu0 %v2325_v0  ;;  %v484_v55 = vld [vmem:[%s2505_s6 + $0xb0] sm:$0xff] }
  0x80   : > { %2029 = vmatprep.subr.bf16.mxu1 %v563_v60  ;;  %744 = vmatprep.mubr.bf16.mxu1 %v2325_v0  ;;  %v505_v57 = vpack.c.bf16 %v485_v56, %v484_v55 }
  0x83   : > { %2030 = vmatpush3.bf16.msra.mxu1 %v563_v60 }
  0x84   : > { %2031 = vmatprep.subr.bf16.mxu1 %v566_v4 }
  0x86   : > { %625 = vmatmul.mubr.bf16.gmra.mrb[4].mxu0 %v495_v7  ;;  %745 = vmatmul.mubr.bf16.gmra.mrb[4].mxu1 %v2533_v8 }
  0x87   : > { %2032 = vmatpush3.bf16.msra.mxu1 %v566_v4  ;;  %634 = vmatprep.mubr.bf16.mxu0 %v2325_v0 }
  0x88   : > { %2033 = vmatprep.subr.bf16.mxu1 %v569_v9  ;;  %754 = vmatprep.mubr.bf16.mxu1 %v2325_v0 }
  0x8b   : > { %2034 = vmatpush3.bf16.msra.mxu1 %v569_v9 }
  0x8c   : > { %2035 = vmatprep.subr.bf16.mxu1 %v572_v16 }
  0x8e   : > { %635 = vmatmul.mubr.bf16.gmra.mrb[8].mxu0 %v496_v19  ;;  %755 = vmatmul.mubr.bf16.gmra.mrb[8].mxu1 %v2542_v20 }
  0x8f   : > { %2036 = vmatpush3.bf16.msra.mxu1 %v572_v16  ;;  %644 = vmatprep.mubr.bf16.mxu0 %v2325_v0 }
  0x90   : > { %2037 = vmatprep.subr.bf16.mxu1 %v575_v21  ;;  %764 = vmatprep.mubr.bf16.mxu1 %v2325_v0 }
  0x93   : > { %2038 = vmatpush3.bf16.msra.mxu1 %v575_v21 }
  0x94   : > { %2039 = vmatprep.subr.bf16.mxu1 %v578_v28 }
  0x96   : > { %645 = vmatmul.mubr.bf16.gmra.mrb[12].mxu0 %v497_v31  ;;  %765 = vmatmul.mubr.bf16.gmra.mrb[12].mxu1 %v2551_v32 }
  0x97   : > { %2040 = vmatpush3.bf16.msra.mxu1 %v578_v28  ;;  %654 = vmatprep.mubr.bf16.mxu0 %v2325_v0 }
  0x98   : > { %2041 = vmatprep.subr.bf16.mxu1 %v581_v33  ;;  %2043 = vmatprep.mubr.bf16.mxu1 %v2521_v58  ;;  %v1229_v58 = vlaneseq }
  0x9a   : > { %v2583_v60 = vshrl.u32 %v1229_v58, 7 }
  0x9b   : > { %2042 = vmatpush3.bf16.msra.mxu1 %v581_v33 }
  0x9c   : > { %v1231_v61 = vsub.s32 0, %v2583_v60 }
  0x9e   : > { %655 = vmatmul.mubr.bf16.gmra.mrb[16].mxu0 %v498_v36  ;;  %2044 = vmatmul.mubr.bf16.vlgmr.msra.gmra.mrb[16].mxu1 %v495_v7  ;;  %v2593_v63 = vrot.slane %v2589_v62, %v1231_v61 }
  0x9f   : > { %664 = vmatprep.mubr.bf16.mxu0 %v2325_v0  ;;  %2047 = vmatprep.mubr.bf16.mxu1 %v496_v19 }
  0xa6   : > { %665 = vmatmul.mubr.bf16.gmra.mrb[20].mxu0 %v499_v39  ;;  %2048 = vmatmul.mubr.bf16.gmra.mrb[20].mxu1 %v497_v31 }
  0xa7   : > { %674 = vmatprep.mubr.bf16.mxu0 %v2325_v0  ;;  %2051 = vmatprep.mubr.bf16.mxu1 %v498_v36 }
  0xae   : > { %675 = vmatmul.mubr.bf16.gmra.mrb[24].mxu0 %v500_v42  ;;  %2052 = vmatmul.mubr.bf16.gmra.mrb[24].mxu1 %v499_v39 }
  0xaf   : > { %684 = vmatprep.mubr.bf16.mxu0 %v2325_v0  ;;  %2055 = vmatprep.mubr.bf16.mxu1 %v500_v42 }
  0xb6   : > { %685 = vmatmul.mubr.bf16.gmra.mrb[28].mxu0 %v501_v47  ;;  %2056 = vmatmul.mubr.bf16.gmra.mrb[28].mxu1 %v501_v47 }
  0xb7   : > { %694 = vmatprep.mubr.bf16.mxu0 %v2325_v0  ;;  %2059 = vmatprep.mubr.bf16.mxu1 %v502_v48 }
  0xbe   : > { %695 = vmatmul.mubr.bf16.gmra.mrb[32].mxu0 %v502_v48  ;;  %2060 = vmatmul.mubr.bf16.gmra.mrb[32].mxu1 %v503_v53 }
  0xbf   : > { %704 = vmatprep.mubr.bf16.mxu0 %v2325_v0  ;;  %2063 = vmatprep.mubr.bf16.mxu1 %v504_v54 }
  0xc6   : > { %705 = vmatmul.mubr.bf16.gmra.mrb[36].mxu0 %v503_v53  ;;  %2064 = vmatmul.mubr.bf16.gmra.mrb[36].mxu1 %v505_v57 }
  0xc7   : > { %714 = vmatprep.mubr.bf16.mxu0 %v2325_v0  ;;  %2067 = vmatprep.mubr.bf16.mxu1 %v2523_v59  ;;  %v1235_v59 = vsub.s32 1, %v2583_v60 }
  0xce   : > { %715 = vmatmul.mubr.bf16.gmra.mrb[40].mxu0 %v504_v54  ;;  %2068 = vmatmul.mubr.bf16.gmra.mrb[40].mxu1 %v2533_v8 }
  0xcf   : > { %724 = vmatprep.mubr.bf16.mxu0 %v2325_v0  ;;  %2071 = vmatprep.mubr.bf16.mxu1 %v2542_v20  ;;  %v2596_v0 = vrot.slane %v2589_v62, %v1235_v59 }
  0xd6   : > { %725 = vmatmul.mubr.bf16.gmra.mrb[44].mxu0 %v505_v57  ;;  %2072 = vmatmul.mubr.bf16.gmra.mrb[44].mxu1 %v2551_v32 }
 0x151   : > { %v616_v1 = vpop.f32.mrb[0].mxu0  ;;  %v736_v2 = vpop.f32.mrb[0].mxu1 }
 0x152   : > { %v1244_v3 = vadd.f32 %v2593_v63, %v616_v1  ;;  %v1316_v4 = vadd.f32 %v2593_v63, %v736_v2  ;;  %v618_v5 = vpop.f32.mrb[1].mxu0  ;;  %v738_v6 = vpop.f32.mrb[1].mxu1 }
 0x153   : > { %v1245_v7 = vadd.f32 %v2596_v0, %v618_v5  ;;  %v1317_v8 = vadd.f32 %v2596_v0, %v738_v6  ;;  %v620_v9 = vpop.f32.mrb[2].mxu0  ;;  %v740_v10 = vpop.f32.mrb[2].mxu1 }
 0x154   : > { %v1247_v11 = vadd.f32 %v2593_v63, %v620_v9  ;;  %v1319_v12 = vadd.f32 %v2593_v63, %v740_v10  ;;  %v622_v13 = vpop.f32.mrb[3].mxu0  ;;  %v742_v14 = vpop.f32.mrb[3].mxu1 }
 0x155   : > { %v1939_v15 = vpack.c.bf16 %v1245_v7, %v1244_v3  ;;  %v1987_v16 = vpack.c.bf16 %v1317_v8, %v1316_v4  ;;  %v1248_v17 = vadd.f32 %v2596_v0, %v622_v13  ;;  %v1320_v18 = vadd.f32 %v2596_v0, %v742_v14 }
 0x156   : > { %v1239_v7 = vsub.s32 2, %v2583_v60 }
 0x157   : > { %1660 = vst [vmem:[%s2607_s9] sm:$0xff] %v1939_v15  ;;  %1708 = vst [vmem:[%s2607_s9 + $0x120] sm:$0xff] %v1987_v16  ;;  %v1941_v19 = vpack.c.bf16 %v1248_v17, %v1247_v11  ;;  %v1989_v20 = vpack.c.bf16 %v1320_v18, %v1319_v12 }
 0x159   : > { %1662 = vst [vmem:[%s2607_s9 + $0xc] sm:$0xff] %v1941_v19  ;;  %1710 = vst [vmem:[%s2607_s9 + $0x12c] sm:$0xff] %v1989_v20  ;;  %v626_v21 = vpop.f32.mrb[4].mxu0  ;;  %v746_v22 = vpop.f32.mrb[4].mxu1  ;;  %v2647_v19 = vrot.slane %v2589_v62, %v1239_v7 }
 0x15a   : > { %v1250_v23 = vadd.f32 %v2593_v63, %v626_v21  ;;  %v1322_v24 = vadd.f32 %v2593_v63, %v746_v22  ;;  %v628_v25 = vpop.f32.mrb[5].mxu0  ;;  %v748_v26 = vpop.f32.mrb[5].mxu1 }
 0x15b   : > { %v1251_v27 = vadd.f32 %v2596_v0, %v628_v25  ;;  %v1323_v28 = vadd.f32 %v2596_v0, %v748_v26  ;;  %v630_v29 = vpop.f32.mrb[6].mxu0  ;;  %v750_v30 = vpop.f32.mrb[6].mxu1 }
 0x15c   : > { %v1253_v31 = vadd.f32 %v2593_v63, %v630_v29  ;;  %v1325_v32 = vadd.f32 %v2593_v63, %v750_v30  ;;  %v632_v33 = vpop.f32.mrb[7].mxu0  ;;  %v752_v34 = vpop.f32.mrb[7].mxu1 }
 0x15d   : > { %v1943_v35 = vpack.c.bf16 %v1251_v27, %v1250_v23  ;;  %v1991_v36 = vpack.c.bf16 %v1323_v28, %v1322_v24  ;;  %v1254_v37 = vadd.f32 %v2596_v0, %v632_v33  ;;  %v1326_v38 = vadd.f32 %v2596_v0, %v752_v34 }
 0x15f   : > { %1664 = vst [vmem:[%s2607_s9 + $0x18] sm:$0xff] %v1943_v35  ;;  %1712 = vst [vmem:[%s2607_s9 + $0x138] sm:$0xff] %v1991_v36  ;;  %v1945_v39 = vpack.c.bf16 %v1254_v37, %v1253_v31  ;;  %v1993_v40 = vpack.c.bf16 %v1326_v38, %v1325_v32 }
 0x161   : > { %1666 = vst [vmem:[%s2607_s9 + $0x24] sm:$0xff] %v1945_v39  ;;  %1714 = vst [vmem:[%s2607_s9 + $0x144] sm:$0xff] %v1993_v40  ;;  %v636_v41 = vpop.f32.mrb[8].mxu0  ;;  %v756_v42 = vpop.f32.mrb[8].mxu1 }
 0x162   : > { %v1256_v43 = vadd.f32 %v2593_v63, %v636_v41  ;;  %v1328_v44 = vadd.f32 %v2593_v63, %v756_v42  ;;  %v638_v45 = vpop.f32.mrb[9].mxu0  ;;  %v758_v46 = vpop.f32.mrb[9].mxu1 }
 0x163   : > { %v1257_v47 = vadd.f32 %v2596_v0, %v638_v45  ;;  %v1329_v48 = vadd.f32 %v2596_v0, %v758_v46  ;;  %v640_v49 = vpop.f32.mrb[10].mxu0  ;;  %v760_v50 = vpop.f32.mrb[10].mxu1 }
 0x164   : > { %v1259_v51 = vadd.f32 %v2593_v63, %v640_v49  ;;  %v1331_v52 = vadd.f32 %v2593_v63, %v760_v50  ;;  %v642_v53 = vpop.f32.mrb[11].mxu0  ;;  %v762_v54 = vpop.f32.mrb[11].mxu1 }
 0x165   : > { %v1947_v55 = vpack.c.bf16 %v1257_v47, %v1256_v43  ;;  %v1995_v56 = vpack.c.bf16 %v1329_v48, %v1328_v44  ;;  %v1260_v57 = vadd.f32 %v2596_v0, %v642_v53  ;;  %v1332_v58 = vadd.f32 %v2596_v0, %v762_v54 }
 0x167   : > { %1668 = vst [vmem:[%s2607_s9 + $0x30] sm:$0xff] %v1947_v55  ;;  %1716 = vst [vmem:[%s2607_s9 + $0x150] sm:$0xff] %v1995_v56  ;;  %v1949_v61 = vpack.c.bf16 %v1260_v57, %v1259_v51  ;;  %v1997_v59 = vpack.c.bf16 %v1332_v58, %v1331_v52 }
 0x169   : > { %1670 = vst [vmem:[%s2607_s9 + $0x3c] sm:$0xff] %v1949_v61  ;;  %1718 = vst [vmem:[%s2607_s9 + $0x15c] sm:$0xff] %v1997_v59  ;;  %v646_v1 = vpop.f32.mrb[12].mxu0  ;;  %v766_v2 = vpop.f32.mrb[12].mxu1 }
 0x16a   : > { %v1262_v3 = vadd.f32 %v2593_v63, %v646_v1  ;;  %v1334_v4 = vadd.f32 %v2593_v63, %v766_v2  ;;  %v648_v5 = vpop.f32.mrb[13].mxu0  ;;  %v768_v6 = vpop.f32.mrb[13].mxu1 }
 0x16b   : > { %v1263_v8 = vadd.f32 %v2596_v0, %v648_v5  ;;  %v1335_v9 = vadd.f32 %v2596_v0, %v768_v6  ;;  %v650_v10 = vpop.f32.mrb[14].mxu0  ;;  %v770_v11 = vpop.f32.mrb[14].mxu1 }
 0x16c   : > { %v1265_v12 = vadd.f32 %v2593_v63, %v650_v10  ;;  %v1337_v13 = vadd.f32 %v2593_v63, %v770_v11  ;;  %v652_v14 = vpop.f32.mrb[15].mxu0  ;;  %v772_v15 = vpop.f32.mrb[15].mxu1 }
 0x16d   : > { %v1951_v16 = vpack.c.bf16 %v1263_v8, %v1262_v3  ;;  %v1999_v17 = vpack.c.bf16 %v1335_v9, %v1334_v4  ;;  %v1266_v18 = vadd.f32 %v2596_v0, %v652_v14  ;;  %v1338_v60 = vadd.f32 %v2596_v0, %v772_v15 }
 0x16f   : > { %1672 = vst [vmem:[%s2607_s9 + $0x48] sm:$0xff] %v1951_v16  ;;  %1720 = vst [vmem:[%s2607_s9 + $0x168] sm:$0xff] %v1999_v17  ;;  %v1953_v20 = vpack.c.bf16 %v1266_v18, %v1265_v12  ;;  %v2001_v21 = vpack.c.bf16 %v1338_v60, %v1337_v13 }
 0x171   : > { %1674 = vst [vmem:[%s2607_s9 + $0x54] sm:$0xff] %v1953_v20  ;;  %1722 = vst [vmem:[%s2607_s9 + $0x174] sm:$0xff] %v2001_v21  ;;  %v656_v22 = vpop.f32.mrb[16].mxu0  ;;  %v2045_v23 = vpop.f32.mrb[16].mxu1 }
 0x172   : > { %v1268_v24 = vadd.f32 %v2593_v63, %v656_v22  ;;  %v1252_v25 = vadd.f32 %v2045_v23, %v2647_v19  ;;  %v658_v26 = vpop.f32.mrb[17].mxu0  ;;  %v809_v27 = vpop.f32.mrb[17].mxu1 }
 0x173   : > { %v1269_v28 = vadd.f32 %v2596_v0, %v658_v26  ;;  %v1246_v62 = vadd.f32 %v2647_v19, %v809_v27  ;;  %v660_v29 = vpop.f32.mrb[18].mxu0  ;;  %v2046_v30 = vpop.f32.mrb[18].mxu1 }
 0x174   : > { %v1944_v31 = vpack.c.bf16 %v1252_v25, %v1252_v25  ;;  %v1271_v32 = vadd.f32 %v2593_v63, %v660_v29  ;;  %v1255_v33 = vadd.f32 %v2046_v30, %v2647_v19  ;;  %v662_v34 = vpop.f32.mrb[19].mxu0  ;;  %v812_v35 = vpop.f32.mrb[19].mxu1 }
 0x175   : > { %v1955_v36 = vpack.c.bf16 %v1269_v28, %v1268_v24  ;;  %v1940_v37 = vpack.c.bf16 %v1246_v62, %v1246_v62  ;;  %v1272_v38 = vadd.f32 %v2596_v0, %v662_v34  ;;  %v1249_v39 = vadd.f32 %v2647_v19, %v812_v35 }
 0x176   : > { %1665 = vst [vmem:[%s2607_s9 + $0x20] sm:$0xf] %v1944_v31  ;;  %v1946_v40 = vpack.c.bf16 %v1255_v33, %v1255_v33 }
 0x177   : > { %1676 = vst [vmem:[%s2607_s9 + $0x60] sm:$0xff] %v1955_v36  ;;  %1661 = vst [vmem:[%s2607_s9 + $0x8] sm:$0xf] %v1940_v37  ;;  %v1957_v41 = vpack.c.bf16 %v1272_v38, %v1271_v32  ;;  %v1942_v42 = vpack.c.bf16 %v1249_v39, %v1249_v39 }
 0x178   : > { %1667 = vst [vmem:[%s2607_s9 + $0x2c] sm:$0xf] %v1946_v40 }
 0x179   : > { %1678 = vst [vmem:[%s2607_s9 + $0x6c] sm:$0xff] %v1957_v41  ;;  %1663 = vst [vmem:[%s2607_s9 + $0x14] sm:$0xf] %v1942_v42  ;;  %v666_v43 = vpop.f32.mrb[20].mxu0  ;;  %v2049_v44 = vpop.f32.mrb[20].mxu1 }
 0x17a   : > { %v1274_v45 = vadd.f32 %v2593_v63, %v666_v43  ;;  %v1264_v46 = vadd.f32 %v2049_v44, %v2647_v19  ;;  %v668_v47 = vpop.f32.mrb[21].mxu0  ;;  %v825_v48 = vpop.f32.mrb[21].mxu1 }
 0x17b   : > { %v1275_v49 = vadd.f32 %v2596_v0, %v668_v47  ;;  %v1258_v50 = vadd.f32 %v2647_v19, %v825_v48  ;;  %v670_v51 = vpop.f32.mrb[22].mxu0  ;;  %v2050_v52 = vpop.f32.mrb[22].mxu1 }
 0x17c   : > { %v1952_v53 = vpack.c.bf16 %v1264_v46, %v1264_v46  ;;  %v1277_v54 = vadd.f32 %v2593_v63, %v670_v51  ;;  %v1267_v55 = vadd.f32 %v2050_v52, %v2647_v19  ;;  %v672_v56 = vpop.f32.mrb[23].mxu0  ;;  %v828_v57 = vpop.f32.mrb[23].mxu1 }
 0x17d   : > { %v1959_v58 = vpack.c.bf16 %v1275_v49, %v1274_v45  ;;  %v1948_v61 = vpack.c.bf16 %v1258_v50, %v1258_v50  ;;  %v1278_v59 = vadd.f32 %v2596_v0, %v672_v56  ;;  %v1261_v1 = vadd.f32 %v2647_v19, %v828_v57 }
 0x17e   : > { %1673 = vst [vmem:[%s2607_s9 + $0x50] sm:$0xf] %v1952_v53  ;;  %v1954_v2 = vpack.c.bf16 %v1267_v55, %v1267_v55 }
 0x17f   : > { %1680 = vst [vmem:[%s2607_s9 + $0x78] sm:$0xff] %v1959_v58  ;;  %1669 = vst [vmem:[%s2607_s9 + $0x38] sm:$0xf] %v1948_v61  ;;  %v1961_v3 = vpack.c.bf16 %v1278_v59, %v1277_v54  ;;  %v1950_v4 = vpack.c.bf16 %v1261_v1, %v1261_v1 }
 0x180   : > { %1675 = vst [vmem:[%s2607_s9 + $0x5c] sm:$0xf] %v1954_v2 }
 0x181   : > { %1682 = vst [vmem:[%s2607_s9 + $0x84] sm:$0xff] %v1961_v3  ;;  %1671 = vst [vmem:[%s2607_s9 + $0x44] sm:$0xf] %v1950_v4  ;;  %v676_v5 = vpop.f32.mrb[24].mxu0  ;;  %v2053_v6 = vpop.f32.mrb[24].mxu1 }
 0x182   : > { %v1280_v7 = vadd.f32 %v2593_v63, %v676_v5  ;;  %v1276_v8 = vadd.f32 %v2053_v6, %v2647_v19  ;;  %v678_v9 = vpop.f32.mrb[25].mxu0  ;;  %v841_v10 = vpop.f32.mrb[25].mxu1 }
 0x183   : > { %v1281_v11 = vadd.f32 %v2596_v0, %v678_v9  ;;  %v1270_v12 = vadd.f32 %v2647_v19, %v841_v10  ;;  %v680_v13 = vpop.f32.mrb[26].mxu0  ;;  %v2054_v14 = vpop.f32.mrb[26].mxu1 }
 0x184   : > { %v1960_v15 = vpack.c.bf16 %v1276_v8, %v1276_v8  ;;  %v1283_v16 = vadd.f32 %v2593_v63, %v680_v13  ;;  %v1279_v17 = vadd.f32 %v2054_v14, %v2647_v19  ;;  %v682_v18 = vpop.f32.mrb[27].mxu0  ;;  %v844_v60 = vpop.f32.mrb[27].mxu1 }
 0x185   : > { %v1963_v20 = vpack.c.bf16 %v1281_v11, %v1280_v7  ;;  %v1956_v21 = vpack.c.bf16 %v1270_v12, %v1270_v12  ;;  %v1284_v22 = vadd.f32 %v2596_v0, %v682_v18  ;;  %v1273_v23 = vadd.f32 %v2647_v19, %v844_v60 }
 0x186   : > { %1681 = vst [vmem:[%s2607_s9 + $0x80] sm:$0xf] %v1960_v15  ;;  %v1962_v24 = vpack.c.bf16 %v1279_v17, %v1279_v17 }
 0x187   : > { %1684 = vst [vmem:[%s2607_s9 + $0x90] sm:$0xff] %v1963_v20  ;;  %1677 = vst [vmem:[%s2607_s9 + $0x68] sm:$0xf] %v1956_v21  ;;  %v1965_v25 = vpack.c.bf16 %v1284_v22, %v1283_v16  ;;  %v1958_v26 = vpack.c.bf16 %v1273_v23, %v1273_v23 }
 0x188   : > { %1683 = vst [vmem:[%s2607_s9 + $0x8c] sm:$0xf] %v1962_v24 }
 0x189   : > { %1686 = vst [vmem:[%s2607_s9 + $0x9c] sm:$0xff] %v1965_v25  ;;  %1679 = vst [vmem:[%s2607_s9 + $0x74] sm:$0xf] %v1958_v26  ;;  %v686_v27 = vpop.f32.mrb[28].mxu0  ;;  %v2057_v28 = vpop.f32.mrb[28].mxu1 }
 0x18a   : > { %v1286_v62 = vadd.f32 %v2593_v63, %v686_v27  ;;  %v1288_v29 = vadd.f32 %v2057_v28, %v2647_v19  ;;  %v688_v30 = vpop.f32.mrb[29].mxu0  ;;  %v857_v31 = vpop.f32.mrb[29].mxu1 }
 0x18b   : > { %v1287_v32 = vadd.f32 %v2596_v0, %v688_v30  ;;  %v1282_v33 = vadd.f32 %v2647_v19, %v857_v31  ;;  %v690_v34 = vpop.f32.mrb[30].mxu0  ;;  %v2058_v35 = vpop.f32.mrb[30].mxu1 }
 0x18c   : > { %v1968_v36 = vpack.c.bf16 %v1288_v29, %v1288_v29  ;;  %v1289_v37 = vadd.f32 %v2593_v63, %v690_v34  ;;  %v1291_v38 = vadd.f32 %v2058_v35, %v2647_v19  ;;  %v692_v39 = vpop.f32.mrb[31].mxu0  ;;  %v860_v40 = vpop.f32.mrb[31].mxu1 }
 0x18d   : > { %v1967_v41 = vpack.c.bf16 %v1287_v32, %v1286_v62  ;;  %v1964_v42 = vpack.c.bf16 %v1282_v33, %v1282_v33  ;;  %v1290_v43 = vadd.f32 %v2596_v0, %v692_v39  ;;  %v1285_v44 = vadd.f32 %v2647_v19, %v860_v40 }
 0x18e   : > { %1689 = vst [vmem:[%s2607_s9 + $0xb0] sm:$0xf] %v1968_v36  ;;  %v1970_v45 = vpack.c.bf16 %v1291_v38, %v1291_v38 }
 0x18f   : > { %1688 = vst [vmem:[%s2607_s9 + $0xa8] sm:$0xff] %v1967_v41  ;;  %1685 = vst [vmem:[%s2607_s9 + $0x98] sm:$0xf] %v1964_v42  ;;  %v1969_v46 = vpack.c.bf16 %v1290_v43, %v1289_v37  ;;  %v1966_v47 = vpack.c.bf16 %v1285_v44, %v1285_v44 }
 0x190   : > { %1691 = vst [vmem:[%s2607_s9 + $0xbc] sm:$0xf] %v1970_v45 }
 0x191   : > { %1690 = vst [vmem:[%s2607_s9 + $0xb4] sm:$0xff] %v1969_v46  ;;  %1687 = vst [vmem:[%s2607_s9 + $0xa4] sm:$0xf] %v1966_v47  ;;  %v696_v48 = vpop.f32.mrb[32].mxu0  ;;  %v2061_v49 = vpop.f32.mrb[32].mxu1 }
 0x192   : > { %v1292_v50 = vadd.f32 %v2593_v63, %v696_v48  ;;  %v1300_v51 = vadd.f32 %v2061_v49, %v2647_v19  ;;  %v698_v52 = vpop.f32.mrb[33].mxu0  ;;  %v873_v53 = vpop.f32.mrb[33].mxu1 }
 0x193   : > { %v1293_v54 = vadd.f32 %v2596_v0, %v698_v52  ;;  %v1294_v55 = vadd.f32 %v2647_v19, %v873_v53  ;;  %v700_v56 = vpop.f32.mrb[34].mxu0  ;;  %v2062_v57 = vpop.f32.mrb[34].mxu1 }
 0x194   : > { %v1976_v58 = vpack.c.bf16 %v1300_v51, %v1300_v51  ;;  %v1295_v61 = vadd.f32 %v2593_v63, %v700_v56  ;;  %v1303_v59 = vadd.f32 %v2062_v57, %v2647_v19  ;;  %v702_v1 = vpop.f32.mrb[35].mxu0  ;;  %v876_v2 = vpop.f32.mrb[35].mxu1 }
 0x195   : > { %v1971_v3 = vpack.c.bf16 %v1293_v54, %v1292_v50  ;;  %v1972_v4 = vpack.c.bf16 %v1294_v55, %v1294_v55  ;;  %v1296_v5 = vadd.f32 %v2596_v0, %v702_v1  ;;  %v1297_v6 = vadd.f32 %v2647_v19, %v876_v2 }
 0x196   : > { %1697 = vst [vmem:[%s2607_s9 + $0xe0] sm:$0xf] %v1976_v58  ;;  %v1978_v7 = vpack.c.bf16 %v1303_v59, %v1303_v59 }
 0x197   : > { %1692 = vst [vmem:[%s2607_s9 + $0xc0] sm:$0xff] %v1971_v3  ;;  %1693 = vst [vmem:[%s2607_s9 + $0xc8] sm:$0xf] %v1972_v4  ;;  %v1973_v8 = vpack.c.bf16 %v1296_v5, %v1295_v61  ;;  %v1974_v9 = vpack.c.bf16 %v1297_v6, %v1297_v6 }
 0x198   : > { %1699 = vst [vmem:[%s2607_s9 + $0xec] sm:$0xf] %v1978_v7 }
 0x199   : > { %1694 = vst [vmem:[%s2607_s9 + $0xcc] sm:$0xff] %v1973_v8  ;;  %1695 = vst [vmem:[%s2607_s9 + $0xd4] sm:$0xf] %v1974_v9  ;;  %v706_v10 = vpop.f32.mrb[36].mxu0  ;;  %v2065_v11 = vpop.f32.mrb[36].mxu1 }
 0x19a   : > { %v1298_v12 = vadd.f32 %v2593_v63, %v706_v10  ;;  %v1312_v13 = vadd.f32 %v2065_v11, %v2647_v19  ;;  %v708_v14 = vpop.f32.mrb[37].mxu0  ;;  %v889_v15 = vpop.f32.mrb[37].mxu1 }
 0x19b   : > { %v1299_v16 = vadd.f32 %v2596_v0, %v708_v14  ;;  %v1306_v17 = vadd.f32 %v2647_v19, %v889_v15  ;;  %v710_v18 = vpop.f32.mrb[38].mxu0  ;;  %v2066_v60 = vpop.f32.mrb[38].mxu1 }
 0x19c   : > { %v1984_v20 = vpack.c.bf16 %v1312_v13, %v1312_v13  ;;  %v1301_v21 = vadd.f32 %v2593_v63, %v710_v18  ;;  %v1315_v22 = vadd.f32 %v2066_v60, %v2647_v19  ;;  %v712_v23 = vpop.f32.mrb[39].mxu0  ;;  %v892_v24 = vpop.f32.mrb[39].mxu1 }
 0x19d   : > { %v1975_v25 = vpack.c.bf16 %v1299_v16, %v1298_v12  ;;  %v1980_v26 = vpack.c.bf16 %v1306_v17, %v1306_v17  ;;  %v1302_v27 = vadd.f32 %v2596_v0, %v712_v23  ;;  %v1309_v28 = vadd.f32 %v2647_v19, %v892_v24 }
 0x19e   : > { %1705 = vst [vmem:[%s2607_s9 + $0x110] sm:$0xf] %v1984_v20  ;;  %v1986_v62 = vpack.c.bf16 %v1315_v22, %v1315_v22 }
 0x19f   : > { %1696 = vst [vmem:[%s2607_s9 + $0xd8] sm:$0xff] %v1975_v25  ;;  %1701 = vst [vmem:[%s2607_s9 + $0xf8] sm:$0xf] %v1980_v26  ;;  %v1977_v29 = vpack.c.bf16 %v1302_v27, %v1301_v21  ;;  %v1982_v30 = vpack.c.bf16 %v1309_v28, %v1309_v28 }
 0x1a0   : > { %1707 = vst [vmem:[%s2607_s9 + $0x11c] sm:$0xf] %v1986_v62 }
 0x1a1   : > { %1698 = vst [vmem:[%s2607_s9 + $0xe4] sm:$0xff] %v1977_v29  ;;  %1703 = vst [vmem:[%s2607_s9 + $0x104] sm:$0xf] %v1982_v30  ;;  %v716_v31 = vpop.f32.mrb[40].mxu0  ;;  %v2069_v32 = vpop.f32.mrb[40].mxu1 }
 0x1a2   : > { %v1304_v33 = vadd.f32 %v2593_v63, %v716_v31  ;;  %v1324_v34 = vadd.f32 %v2069_v32, %v2647_v19  ;;  %v718_v35 = vpop.f32.mrb[41].mxu0  ;;  %v905_v36 = vpop.f32.mrb[41].mxu1 }
 0x1a3   : > { %v1305_v37 = vadd.f32 %v2596_v0, %v718_v35  ;;  %v1318_v38 = vadd.f32 %v2647_v19, %v905_v36  ;;  %v720_v39 = vpop.f32.mrb[42].mxu0  ;;  %v2070_v40 = vpop.f32.mrb[42].mxu1 }
 0x1a4   : > { %v1992_v41 = vpack.c.bf16 %v1324_v34, %v1324_v34  ;;  %v1307_v42 = vadd.f32 %v2593_v63, %v720_v39  ;;  %v1327_v43 = vadd.f32 %v2070_v40, %v2647_v19  ;;  %v722_v44 = vpop.f32.mrb[43].mxu0  ;;  %v908_v45 = vpop.f32.mrb[43].mxu1 }
 0x1a5   : > { %v1979_v46 = vpack.c.bf16 %v1305_v37, %v1304_v33  ;;  %v1988_v47 = vpack.c.bf16 %v1318_v38, %v1318_v38  ;;  %v1308_v48 = vadd.f32 %v2596_v0, %v722_v44  ;;  %v1321_v49 = vadd.f32 %v2647_v19, %v908_v45 }
 0x1a6   : > { %1713 = vst [vmem:[%s2607_s9 + $0x140] sm:$0xf] %v1992_v41  ;;  %v1994_v50 = vpack.c.bf16 %v1327_v43, %v1327_v43 }
 0x1a7   : > { %1700 = vst [vmem:[%s2607_s9 + $0xf0] sm:$0xff] %v1979_v46  ;;  %1709 = vst [vmem:[%s2607_s9 + $0x128] sm:$0xf] %v1988_v47  ;;  %v1981_v51 = vpack.c.bf16 %v1308_v48, %v1307_v42  ;;  %v1990_v52 = vpack.c.bf16 %v1321_v49, %v1321_v49 }
 0x1a8   : > { %1715 = vst [vmem:[%s2607_s9 + $0x14c] sm:$0xf] %v1994_v50 }
 0x1a9   : > { %1702 = vst [vmem:[%s2607_s9 + $0xfc] sm:$0xff] %v1981_v51  ;;  %1711 = vst [vmem:[%s2607_s9 + $0x134] sm:$0xf] %v1990_v52  ;;  %v726_v53 = vpop.f32.mrb[44].mxu0  ;;  %v2073_v54 = vpop.f32.mrb[44].mxu1 }
 0x1aa   : > { %v1310_v55 = vadd.f32 %v2593_v63, %v726_v53  ;;  %v1336_v56 = vadd.f32 %v2073_v54, %v2647_v19  ;;  %v728_v57 = vpop.f32.mrb[45].mxu0  ;;  %v921_v58 = vpop.f32.mrb[45].mxu1 }
 0x1ab   : > { %v1311_v61 = vadd.f32 %v2596_v0, %v728_v57  ;;  %v1330_v59 = vadd.f32 %v2647_v19, %v921_v58  ;;  %v730_v1 = vpop.f32.mrb[46].mxu0  ;;  %v2074_v2 = vpop.f32.mrb[46].mxu1 }
 0x1ac   : > { %v2000_v3 = vpack.c.bf16 %v1336_v56, %v1336_v56  ;;  %v1313_v4 = vadd.f32 %v2593_v63, %v730_v1  ;;  %v1339_v5 = vadd.f32 %v2074_v2, %v2647_v19  ;;  %v732_v6 = vpop.f32.mrb[47].mxu0  ;;  %v924_v7 = vpop.f32.mrb[47].mxu1 }
 0x1ad   : > { %v1983_v8 = vpack.c.bf16 %v1311_v61, %v1310_v55  ;;  %v1996_v9 = vpack.c.bf16 %v1330_v59, %v1330_v59  ;;  %v1314_v10 = vadd.f32 %v2596_v0, %v732_v6  ;;  %v1333_v11 = vadd.f32 %v2647_v19, %v924_v7 }
 0x1ae   : > { %1721 = vst [vmem:[%s2607_s9 + $0x170] sm:$0xf] %v2000_v3  ;;  %v2002_v12 = vpack.c.bf16 %v1339_v5, %v1339_v5 }
 0x1af   : > { %1704 = vst [vmem:[%s2607_s9 + $0x108] sm:$0xff] %v1983_v8  ;;  %1717 = vst [vmem:[%s2607_s9 + $0x158] sm:$0xf] %v1996_v9  ;;  %v1985_v63 = vpack.c.bf16 %v1314_v10, %v1313_v4  ;;  %v1998_v13 = vpack.c.bf16 %v1333_v11, %v1333_v11 }
 0x1b0   : > { %1723 = vst [vmem:[%s2607_s9 + $0x17c] sm:$0xf] %v2002_v12 }
 0x1b1   : > { %1706 = vst [vmem:[%s2607_s9 + $0x114] sm:$0xff] %v1985_v63  ;;  %1719 = vst [vmem:[%s2607_s9 + $0x164] sm:$0xf] %v1998_v13 }
 0x1b2   : > { %2244 = shalt.err (!%p2241_p5)
}
 0x1b3   : > { %s2245_s29 = scalar_lea.hbm %s2765_s26, 6144  ;;  %s2249_s20 = scalar_lea.hbm %s2824_s3, 12288 }
 0x1b4   : > { %p2246_p9 = scmp.ne.s32.totalorder %s2765_s26, %s2245_s29  ;;  %p2250_p3 = scmp.lt.u32.totalorder %s2765_s26, %s2824_s3 }
 0x1b5   : > { %p2251_p7 = scmp.lt.u32.totalorder %s2249_s20, %s2245_s29  ;;  %p2253_p4 = scmp.lt.u32.totalorder %s2245_s29, %s2765_s26 }
 0x1b6   : > { %p2247_p1 = pnand %p2246_p9, %p2445_p10 }
 0x1b7   : > { %p2252_p13 = por %p2251_p7, %p2250_p3 }
 0x1b8   : > { %p2248_p2 = pneg %p2247_p1 }
 0x1b9   : > { %p2254_p6 = por %p2253_p4, %p2252_p13 }
 0x1bb   : > { %p2255_p8 = pnand %p2254_p6, %p2248_p2 }
 0x1bd   : > { %2258 = shalt.err (!%p2255_p8)
}
 0x1be   : > { %s2327_s9 = smov 192   ;;  %s2328_s10 = smov 12  }
 0x1bf   : > { %2099 = dma.vmem_to_hbm [thread:$0]  (%p2445_p10), %s2767_s11, 6144, %s2765_s26, %s1725_s7, %s2327_s9, %s2327_s9, %s2328_s10  }
 0x1c0 PF: > { %s1756_s15 = sand.u32 1, %s2297_s12   ;;  %p2842_p12 = scmp.ne.s32.totalorder %s2832_s23, 0 }
 0x1c1   : > { %p2843_p11 = scmp.ge.s32.totalorder %s2317_s17, 2  ;;  %s1757_s18 = scalar_lea.sflag [#allocation5], %s1756_s15 }
 0x1c3   : > { %p2110_p0 = pnand %p2843_p11, %p2842_p12 }
 0x1c5   : > { %2292 = dma.done.wait (!%p2110_p0), %s1757_s18, 6144  }
 0x1c6   : > { %2294 = vsyncadd (!%p2110_p0), %s1757_s18, 4294961152  ;;  %s20_s17 = sadd.s32 1, %s2317_s17   ;;  %s2844_s12 = smov %s2301_s13 }
 0x1c7   : > { %p17_p5 = scmp.ge.s32.totalorder %s20_s17, 4   ;;  %s2845_s13 = smov %s2305_s14 }
 0x1c8   : > { %s2846_s14 = smov %s2454_s5  ;;  %s2847_s15 = smov %s2313_s16 }
 0x1c9   : > { %s2848_s16 = smov %s2850_s28  ;;  %19 = sbr.rel (!%p17_p5) target bundleno = 7 (0x7), region = 93 }
 0x1d0   :  { %1762 = vsyncpa [#allocation4], 1 }
 0x1d1   :  { %1764 = vsyncpa [#allocation4 + $0x1], 1 }
 0x1d2   :  { %1765 = vsyncpa [#allocation7], 1 }
 0x1d3   :  { %1766 = vsyncpa [#allocation5], 1 }
 0x1d4   :  { %1768 = vsyncpa [#allocation5 + $0x1], 1 }

</bundles_post_ra>
